<compile_context>
chip_gen: v7x
topology: tpu7x:2x2x1
jax: 0.10.0
libtpu: 0.0.40
codegen_flags: <defaults>
</compile_context>

<pallas_src>
import functools

import jax
import jax.numpy as jnp
from jax.experimental import pallas as pl
from jax.experimental.pallas import tpu as pltpu

_LANES = 128
_ROW_QUANTUM = 16                 # multiple of 16 rows => valid sublane tiling for f32 and bf16
_DEFAULT_MAX_TILE_ROWS = 8192     # (8192,128) f32 = 4 MiB per grid step (x2 double-buffered)
_DEFAULT_ACC_ROWS = 256           # (256,128) f32 = 128 KiB fixed accumulator
_DEFAULT_MIN_PALLAS_ELEMS = 32 * 1024   # below this, fused XLA elementwise+reduce wins


def _loss_elems(x, mode, target, sign):
    """Elementwise GAN loss (shared by kernel, tail and fast paths). x is f32."""
    if mode == "wgan":
        # real: -mean(pred) ; fake: +mean(pred)  (sign baked in at trace time)
        return sign * x
    if mode == "lsgan":
        # MSELoss against a constant target
        d = x - target
        return d * d
    if mode == "vanilla":
        # BCEWithLogitsLoss against a constant target (numerically stable):
        #   max(x, 0) - x*t + log(1 + exp(-|x|))
        return jnp.maximum(x, 0.0) - x * target + jnp.log(1.0 + jnp.exp(-jnp.abs(x)))
    raise NotImplementedError(f"gan mode {mode} not implemented")


def _ganloss_partial_kernel(pred_ref, out_ref, acc_ref, *,
                            mode, target, sign, tile_rows, acc_rows):
    """One grid step: elementwise loss on a (tile_rows, 128) tile, accumulated
    in static chunks into a fixed (acc_rows, 128) f32 VMEM accumulator."""
    t = pl.program_id(1)

    @pl.when(t == 0)
    def _():
        acc_ref[...] = jnp.zeros_like(acc_ref)

    n_chunks = tile_rows // acc_rows
    rem = tile_rows - n_chunks * acc_rows
    for c in range(n_chunks):                      # statically unrolled
        x = pred_ref[pl.ds(c * acc_rows, acc_rows), :].astype(jnp.float32)
        acc_ref[...] += _loss_elems(x, mode, target, sign)
    if rem:  # tail chunk (multiple of 16 rows), folded into the first acc rows
        x = pred_ref[pl.ds(n_chunks * acc_rows, rem), :].astype(jnp.float32)
        acc_ref[pl.ds(0, rem), :] += _loss_elems(x, mode, target, sign)

    @pl.when(t == pl.num_programs(1) - 1)
    def _():
        # Reduce the accumulator to one (8,128) vreg with pure vector adds;
        # the final tiny cross-lane reduce is done by XLA in the wrapper.
        out_ref[...] = jnp.sum(
            acc_ref[...].reshape(acc_rows // 8, 8, _LANES), axis=0)


def gan_loss(prediction, gan_mode, target_is_real,
             target_real_label=1.0, target_fake_label=0.0,
             *, max_tile_rows=_DEFAULT_MAX_TILE_ROWS,
             acc_rows=_DEFAULT_ACC_ROWS,
             min_pallas_elems=_DEFAULT_MIN_PALLAS_ELEMS):
    """Pallas implementation of GANLoss.forward. Returns a scalar float32."""
    if gan_mode not in ("lsgan", "vanilla", "wgan"):
        raise NotImplementedError(f"gan mode {gan_mode} not implemented")

    x = jnp.asarray(prediction).reshape(-1)
    n = x.shape[0]

    # Constants baked in at trace time (like the registered buffers).
    target = float(target_real_label) if target_is_real else float(target_fake_label)
    sign = -1.0 if target_is_real else 1.0   # only used by wgan

    full_rows = n // _LANES
    rows_q = (full_rows // _ROW_QUANTUM) * _ROW_QUANTUM

    # Small-n fast path: a pallas_call launch + pipeline prologue costs several
    # us; typical small discriminator maps are faster with fused XLA.
    if n < min_pallas_elems or rows_q < _ROW_QUANTUM:
        total = jnp.sum(_loss_elems(x.astype(jnp.float32), gan_mode, target, sign))
        return total / jnp.float32(n)

    max_tile_rows = max(_ROW_QUANTUM, (int(max_tile_rows) // _ROW_QUANTUM) * _ROW_QUANTUM)
    acc_rows = max(_ROW_QUANTUM, (int(acc_rows) // _ROW_QUANTUM) * _ROW_QUANTUM)

    # 2-way TensorCore split whenever each half gets at least one accumulator's
    # worth of rows.  Harmless (serial) on single-TC chips.
    num_cores = 2 if rows_q >= 2 * acc_rows else 1
    rows_per_core = ((rows_q // num_cores) // _ROW_QUANTUM) * _ROW_QUANTUM
    tiles_per_core = -(-rows_per_core // max_tile_rows)          # ceil
    tile_rows = max(_ROW_QUANTUM,
                    ((rows_per_core // tiles_per_core) // _ROW_QUANTUM) * _ROW_QUANTUM)
    acc_rows = min(acc_rows, tile_rows)

    rows_main = num_cores * tiles_per_core * tile_rows
    n_main = rows_main * _LANES
    # Pure reshape when n_main == n; otherwise a prefix slice (never a pad copy).
    x_main = x[:n_main].reshape(rows_main, _LANES)

    kernel = functools.partial(
        _ganloss_partial_kernel, mode=gan_mode, target=target, sign=sign,
        tile_rows=tile_rows, acc_rows=acc_rows)

    flops_per = {"wgan": 2, "lsgan": 3, "vanilla": 6}[gan_mode]
    trans_per = 2 if gan_mode == "vanilla" else 0

    partials = pl.pallas_call(
        kernel,
        out_shape=jax.ShapeDtypeStruct((num_cores * 8, _LANES), jnp.float32),
        grid_spec=pltpu.PrefetchScalarGridSpec(
            num_scalar_prefetch=0,
            grid=(num_cores, tiles_per_core),
            in_specs=[pl.BlockSpec(
                (tile_rows, _LANES),
                lambda p, t: (p * tiles_per_core + t, 0))],
            out_specs=pl.BlockSpec((8, _LANES), lambda p, t: (p, 0)),
            scratch_shapes=[pltpu.VMEM((acc_rows, _LANES), jnp.float32)],
        ),
        compiler_params=pltpu.CompilerParams(
            dimension_semantics=("parallel", "arbitrary"),
            vmem_limit_bytes=32 * 1024 * 1024),
        cost_estimate=pl.CostEstimate(
            flops=flops_per * n_main,
            transcendentals=trans_per * n_main,
            bytes_accessed=x_main.dtype.itemsize * n_main
                           + num_cores * 8 * _LANES * 4),
    )(x_main)

    total = jnp.sum(partials)

    # Small tail (rounding rows + sub-row remainder, a tiny fraction of n).
    if n_main < n:
        tail = x[n_main:].astype(jnp.float32)
        total = total + jnp.sum(_loss_elems(tail, gan_mode, target, sign))

    return total / jnp.float32(n)


# ---------------------------- pure-JAX reference -----------------------------
def gan_loss_ref(prediction, gan_mode, target_is_real,
                 target_real_label=1.0, target_fake_label=0.0):
    x = jnp.asarray(prediction).astype(jnp.float32)
    if gan_mode == "wgan":
        return -jnp.mean(x) if target_is_real else jnp.mean(x)
    t = target_real_label if target_is_real else target_fake_label
    if gan_mode == "lsgan":
        return jnp.mean((x - t) ** 2)
    if gan_mode == "vanilla":
        return jnp.mean(jnp.maximum(x, 0.0) - x * t
                        + jnp.log(1.0 + jnp.exp(-jnp.abs(x))))
    raise NotImplementedError(gan_mode)


if __name__ == "__main__":
    key = jax.random.PRNGKey(0)
    k1, k2, k3 = jax.random.split(key, 3)
    cases = [
        # (name, prediction, wrapper kwargs)
        # Typical small discriminator map -> jnp fast path.
        ("small-fastpath",
         jax.random.normal(k1, (2, 4, 16, 16), dtype=jnp.float32) * 2.0, {}),
        # Bigger map -> Pallas path (single core/tile, chunked accumulator + rem chunk).
        ("pallas-default",
         jax.random.normal(k2, (2, 4, 64, 80), dtype=jnp.float32) * 2.0, {}),
        # Ragged size with small tiles -> multi-tile, 2-way core split, jnp tail.
        ("pallas-ragged",
         jax.random.normal(k3, (2, 4, 127, 130), dtype=jnp.float32) * 2.0,
         dict(max_tile_rows=128, acc_rows=64)),
    ]

    ok = True
    for name, pred, kw in cases:
        for mode in ("lsgan", "vanilla", "wgan"):
            for target_is_real in (True, False):
                got = jax.block_until_ready(gan_loss(pred, mode, target_is_real, **kw))
                want = gan_loss_ref(pred, mode, target_is_real)
                if not jnp.allclose(got, want, rtol=1e-4, atol=1e-5):
                    ok = False
                    print(f"MISMATCH case={name} mode={mode} real={target_is_real}: "
                          f"{got} vs {want}")

    if ok:
        print("KERNEL_OK")
</pallas_src>

<mosaic_0001>
module attributes {stable_mosaic.version = 11 : i64} {
  func.func @_ganloss_partial_kernel(%arg0: i32, %arg1: i32, %arg2: memref<320x128xf32, #tpu.memory_space<vmem>>, %arg3: memref<8x128xf32, #tpu.memory_space<vmem>>, %arg4: memref<256x128xf32, #tpu.memory_space<vmem>>) attributes {dimension_semantics = [#tpu.dimension_semantics<parallel>, #tpu.dimension_semantics<arbitrary>], iteration_bounds = array<i64: 1, 1>, scalar_prefetch = 0 : i64, scratch_operands = 1 : i64, tpu.core_type = #tpu.core_type<tc>, window_params = [{transform_indices = @transform_0, window_bounds = array<i64: 320, 128>}, {transform_indices = @transform_1, window_bounds = array<i64: 8, 128>}]} {
    %c0_i32 = arith.constant 0 : i32
    %0 = arith.cmpi eq, %arg1, %c0_i32 : i32
    %1 = arith.extui %0 : i1 to i32
    %c0_i32_0 = arith.constant 0 : i32
    %2 = arith.cmpi ne, %1, %c0_i32_0 : i32
    scf.if %2 {
      %cst_14 = arith.constant 0.000000e+00 : f32
      %20 = vector.broadcast %cst_14 : f32 to vector<256x128xf32>
      %c0_15 = arith.constant 0 : index
      %c0_16 = arith.constant 0 : index
      %21 = vector.load %arg4[%c0_15, %c0_16] : memref<256x128xf32, #tpu.memory_space<vmem>>, vector<256x128xf32>
      tpu.vector_store %arg4[%c0_15, %c0_16], %20 {strides = array<i32>} : memref<256x128xf32, #tpu.memory_space<vmem>>, vector<256x128xf32>,
    } else {
    }
    %c0 = arith.constant 0 : index
    %c0_1 = arith.constant 0 : index
    %3 = vector.load %arg2[%c0, %c0_1] : memref<320x128xf32, #tpu.memory_space<vmem>>, vector<256x128xf32>
    %c0_2 = arith.constant 0 : index
    %c0_3 = arith.constant 0 : index
    %4 = vector.load %arg4[%c0_2, %c0_3] : memref<256x128xf32, #tpu.memory_space<vmem>>, vector<256x128xf32>
    %cst = arith.constant 1.000000e+00 : f32
    %5 = vector.broadcast %cst : f32 to vector<256x128xf32>
    %6 = arith.subf %3, %5 : vector<256x128xf32>
    %7 = arith.mulf %6, %6 : vector<256x128xf32>
    %8 = arith.addf %4, %7 : vector<256x128xf32>
    %c0_4 = arith.constant 0 : index
    %c0_5 = arith.constant 0 : index
    %9 = vector.load %arg4[%c0_4, %c0_5] : memref<256x128xf32, #tpu.memory_space<vmem>>, vector<256x128xf32>
    tpu.vector_store %arg4[%c0_4, %c0_5], %8 {strides = array<i32>} : memref<256x128xf32, #tpu.memory_space<vmem>>, vector<256x128xf32>,
    %c256 = arith.constant 256 : index
    %c0_6 = arith.constant 0 : index
    %10 = vector.load %arg2[%c256, %c0_6] : memref<320x128xf32, #tpu.memory_space<vmem>>, vector<64x128xf32>
    %c0_7 = arith.constant 0 : index
    %c0_8 = arith.constant 0 : index
    %11 = vector.load %arg4[%c0_7, %c0_8] : memref<256x128xf32, #tpu.memory_space<vmem>>, vector<64x128xf32>
    %cst_9 = arith.constant 1.000000e+00 : f32
    %12 = vector.broadcast %cst_9 : f32 to vector<64x128xf32>
    %13 = arith.subf %10, %12 : vector<64x128xf32>
    %14 = arith.mulf %13, %13 : vector<64x128xf32>
    %15 = arith.addf %11, %14 : vector<64x128xf32>
    %c0_10 = arith.constant 0 : index
    %c0_11 = arith.constant 0 : index
    %16 = vector.load %arg4[%c0_10, %c0_11] : memref<256x128xf32, #tpu.memory_space<vmem>>, vector<64x128xf32>
    tpu.vector_store %arg4[%c0_10, %c0_11], %15 {strides = array<i32>} : memref<256x128xf32, #tpu.memory_space<vmem>>, vector<64x128xf32>,
    %c0_i32_12 = arith.constant 0 : i32
    %17 = arith.cmpi eq, %arg1, %c0_i32_12 : i32
    %18 = arith.extui %17 : i1 to i32
    %c0_i32_13 = arith.constant 0 : i32
    %19 = arith.cmpi ne, %18, %c0_i32_13 : i32
    scf.if %19 {
      %c0_14 = arith.constant 0 : index
      %c0_15 = arith.constant 0 : index
      %20 = vector.load %arg4[%c0_14, %c0_15] : memref<256x128xf32, #tpu.memory_space<vmem>>, vector<256x128xf32>
      %21 = vector.shape_cast %20 : vector<256x128xf32> to vector<32x8x128xf32>
      %cst_16 = arith.constant dense<0.000000e+00> : vector<8x128xf32>
      %22 = vector.multi_reduction <add>, %21, %cst_16 [0] : vector<32x8x128xf32> to vector<8x128xf32>
      %c0_17 = arith.constant 0 : index
      %c0_18 = arith.constant 0 : index
      %23 = vector.load %arg3[%c0_17, %c0_18] : memref<8x128xf32, #tpu.memory_space<vmem>>, vector<8x128xf32>
      tpu.vector_store %arg3[%c0_17, %c0_18], %22 {strides = array<i32>} : memref<8x128xf32, #tpu.memory_space<vmem>>, vector<8x128xf32>,
    } else {
    }
    return
  }
  func.func @transform_0(%arg0: i32, %arg1: i32) -> (i32, i32) {
    %c1_i32 = arith.constant 1 : i32
    %0 = arith.muli %arg0, %c1_i32 : i32
    %1 = arith.addi %0, %arg1 : i32
    %c0_i32 = arith.constant 0 : i32
    %c0_i32_0 = arith.constant 0 : i32
    return %1, %c0_i32 : i32, i32
  }
  func.func @transform_1(%arg0: i32, %arg1: i32) -> (i32, i32) {
    %c0_i32 = arith.constant 0 : i32
    %c0_i32_0 = arith.constant 0 : i32
    return %arg0, %c0_i32 : i32, i32
  }
}

</mosaic_0001>

<bundles_post_ra>
// kernel: tpu_custom_call.1
= control target key start
LH: loop header
LB: loop body
LE: loop exit
PB: predicated region body
PF: predicated region fallthrough
CT: control target
= control target key end

     0   :  { %6 = vsyncpa [#allocation4], 0  ;;  %s517_s0 = inlined_call_operand.hbm [shape: f32[320,128], index: 0, kind: input, shape index: {}]   ;;  %s518_s1 = inlined_call_operand.hbm [shape: f32[8,128], index: 1, kind: output, shape index: {}]  }
   0x1   :  { %7 = vsyncpa [#allocation5], 0  ;;  %s479_s6 = smov [#allocation3]   ;;  %s431_s10 = scalar_lea.hbm %s517_s0, 5120 }
   0x2   :  { %s17_s7 = sshll.u32 %s479_s6, 4  ;;  %p432_p0 = scmp.ne.s32.totalorder %s517_s0, %s431_s10  ;;  %s18_s7 = int_to_ptr.vmem [resolvable:$true] %s17_s7 }
   0x3   :  { %p435_p1 = scmp.lt.u32.totalorder %s431_s10, %s517_s0 }
   0x5   :  { %p437_p2 = pnand %p435_p1, %p432_p0 }
   0x7   :  { %440 = shalt.err (!%p437_p2)
}
   0x8   :  { %s441_s15 = scalar_lea.vmem %s18_s7, 5120  ;;  %p446_p4 = scmp.lt.s32.totalorder %s18_s7, %s18_s7 }
   0x9   :  { %p442_p3 = scmp.ne.s32.totalorder %s18_s7, %s441_s15  ;;  %p447_p5 = scmp.lt.s32.totalorder %s441_s15, %s441_s15 }
   0xb   :  { %p448_p6 = por %p447_p5, %p446_p4 }
   0xd   :  { %p449_p7 = pnand %p448_p6, %p442_p3 }
   0xf   :  { %452 = shalt.err (!%p449_p7)
}
  0x10   :  { %s480_s16 = smov 128   ;;  %s481_s17 = smov 8  }
  0x11   :  { %23 = dma.hbm_to_vmem [thread:$0]  %s517_s0, 5120, %s18_s7, [#allocation4], %s480_s16, %s480_s16, %s481_s17  }
  0x12   :  { %475 = dma.done.wait [#allocation4], 5120  }
  0x13   :  { %476 = vsyncadd [#allocation4], 4294962176  ;;  %v65_v0 = vld [vmem:[#allocation3] sm:$0xff]  ;;  %v66_v1 = vld [vmem:[#allocation3 + $0x8] sm:$0xff]  ;;  %s482_s0 = smov [#allocation6]  }
  0x14   :  { %v67_v2 = vld [vmem:[#allocation3 + $0x10] sm:$0xff]  ;;  %v68_v3 = vld [vmem:[#allocation3 + $0x18] sm:$0xff]  ;;  %v69_v4 = vld [vmem:[#allocation3 + $0x20] sm:$0xff]  ;;  %v387_v6 = vadd.f32 -1.0, %v65_v0  ;;  %v388_v7 = vadd.f32 -1.0, %v66_v1  ;;  %s378_s20 = sshll.u32 %s482_s0, 4  ;;  %s379_s20 = int_to_ptr.vmem [resolvable:$true] %s378_s20 }
  0x15   :  { %v70_v5 = vld [vmem:[#allocation3 + $0x28] sm:$0xff]  ;;  %v389_v8 = vadd.f32 -1.0, %v67_v2  ;;  %v257_v9 = vld [vmem:[#allocation3 + $0x100] sm:$0xff]  ;;  %v390_v11 = vadd.f32 -1.0, %v68_v3  ;;  %v259_v12 = vld [vmem:[#allocation3 + $0x110] sm:$0xff]  ;;  %v391_v15 = vadd.f32 -1.0, %v69_v4  ;;  %p458_p9 = scmp.lt.s32.totalorder %s379_s20, %s379_s20 }
  0x16   :  { %v258_v10 = vld [vmem:[#allocation3 + $0x108] sm:$0xff]  ;;  %v260_v13 = vld [vmem:[#allocation3 + $0x118] sm:$0xff]  ;;  %v261_v14 = vld [vmem:[#allocation3 + $0x120] sm:$0xff]  ;;  %v392_v16 = vadd.f32 -1.0, %v70_v5  ;;  %v161_v19 = vmul.f32 %v387_v6, %v387_v6  ;;  %v162_v20 = vmul.f32 %v388_v7, %v388_v7  ;;  %v419_v21 = vadd.f32 -1.0, %v257_v9  ;;  %s453_s21 = scalar_lea.vmem %s379_s20, 128 }
  0x17   :  { %v262_v17 = vld [vmem:[#allocation3 + $0x128] sm:$0xff]  ;;  %v71_v18 = vld [vmem:[#allocation3 + $0x30] sm:$0xff]  ;;  %v420_v22 = vadd.f32 -1.0, %v258_v10  ;;  %v163_v23 = vmul.f32 %v389_v8, %v389_v8  ;;  %v421_v25 = vadd.f32 -1.0, %v259_v12  ;;  %v422_v26 = vadd.f32 -1.0, %v260_v13  ;;  %v72_v28 = vld [vmem:[#allocation3 + $0x38] sm:$0xff]  ;;  %p454_p8 = scmp.ne.s32.totalorder %s379_s20, %s453_s21  ;;  %p459_p10 = scmp.lt.s32.totalorder %s453_s21, %s453_s21 }
  0x18   :  { %v263_v24 = vld [vmem:[#allocation3 + $0x130] sm:$0xff]  ;;  %v423_v27 = vadd.f32 -1.0, %v261_v14  ;;  %v164_v29 = vmul.f32 %v390_v11, %v390_v11  ;;  %v424_v30 = vadd.f32 -1.0, %v262_v17  ;;  %v281_v31 = vmul.f32 %v419_v21, %v419_v21  ;;  %v264_v35 = vld [vmem:[#allocation3 + $0x138] sm:$0xff]  ;;  %v73_v53 = vld [vmem:[#allocation3 + $0x40] sm:$0xff] }
  0x19   :  { %v282_v32 = vmul.f32 %v420_v22, %v420_v22  ;;  %v393_v33 = vadd.f32 -1.0, %v71_v18  ;;  %v165_v34 = vmul.f32 %v391_v15, %v391_v15  ;;  %v283_v36 = vmul.f32 %v421_v25, %v421_v25  ;;  %v74_v58 = vld [vmem:[#allocation3 + $0x48] sm:$0xff]  ;;  %v75_v62 = vld [vmem:[#allocation3 + $0x50] sm:$0xff]  ;;  %v76_v2 = vld [vmem:[#allocation3 + $0x58] sm:$0xff]  ;;  %p460_p11 = por %p459_p10, %p458_p9 }
  0x1a   :  { %v284_v37 = vmul.f32 %v422_v26, %v422_v26  ;;  %v425_v38 = vadd.f32 -1.0, %v263_v24  ;;  %v285_v39 = vmul.f32 %v423_v27, %v423_v27  ;;  %v289_v40 = vadd.f32 %v281_v31, %v161_v19  ;;  %v77_v6 = vld [vmem:[#allocation3 + $0x60] sm:$0xff]  ;;  %v78_v10 = vld [vmem:[#allocation3 + $0x68] sm:$0xff]  ;;  %v79_v14 = vld [vmem:[#allocation3 + $0x70] sm:$0xff] }
  0x1b   :  { %v290_v41 = vadd.f32 %v282_v32, %v162_v20  ;;  %v394_v42 = vadd.f32 -1.0, %v72_v28  ;;  %v166_v43 = vmul.f32 %v392_v16, %v392_v16  ;;  %v291_v44 = vadd.f32 %v283_v36, %v163_v23  ;;  %v80_v18 = vld [vmem:[#allocation3 + $0x78] sm:$0xff]  ;;  %v81_v22 = vld [vmem:[#allocation3 + $0x80] sm:$0xff]  ;;  %v82_v26 = vld [vmem:[#allocation3 + $0x88] sm:$0xff]  ;;  %p461_p12 = pnand %p460_p11, %p454_p8 }
  0x1c   :  { %v426_v45 = vadd.f32 -1.0, %v264_v35  ;;  %v286_v46 = vmul.f32 %v424_v30, %v424_v30  ;;  %v292_v47 = vadd.f32 %v284_v37, %v164_v29  ;;  %v167_v49 = vmul.f32 %v393_v33, %v393_v33  ;;  %v83_v30 = vld [vmem:[#allocation3 + $0x90] sm:$0xff] }
  0x1d   :  { %v340_v48 = vadd.f32 %v290_v41, %v289_v40  ;;  %v287_v50 = vmul.f32 %v425_v38, %v425_v38  ;;  %v293_v51 = vadd.f32 %v285_v39, %v165_v34  ;;  %v168_v54 = vmul.f32 %v394_v42, %v394_v42  ;;  %v84_v34 = vld [vmem:[#allocation3 + $0x98] sm:$0xff]  ;;  %v85_v38 = vld [vmem:[#allocation3 + $0xa0] sm:$0xff]  ;;  %v86_v42 = vld [vmem:[#allocation3 + $0xa8] sm:$0xff] }
  0x1e   :  { %v288_v55 = vmul.f32 %v426_v45, %v426_v45  ;;  %v294_v56 = vadd.f32 %v286_v46, %v166_v43  ;;  %v395_v59 = vadd.f32 -1.0, %v73_v53  ;;  %v396_v63 = vadd.f32 -1.0, %v74_v58  ;;  %v87_v46 = vld [vmem:[#allocation3 + $0xb0] sm:$0xff]  ;;  %v90_v58 = vld [vmem:[#allocation3 + $0xc8] sm:$0xff] }
  0x1f   :  { %v341_v52 = vadd.f32 %v340_v48, %v291_v44  ;;  %v295_v60 = vadd.f32 %v287_v50, %v167_v49  ;;  %v397_v3 = vadd.f32 -1.0, %v75_v62  ;;  %v398_v7 = vadd.f32 -1.0, %v76_v2  ;;  %v88_v50 = vld [vmem:[#allocation3 + $0xb8] sm:$0xff]  ;;  %v91_v62 = vld [vmem:[#allocation3 + $0xd0] sm:$0xff] }
  0x20   :  { %v296_v0 = vadd.f32 %v288_v55, %v168_v54  ;;  %v169_v4 = vmul.f32 %v395_v59, %v395_v59  ;;  %v170_v8 = vmul.f32 %v396_v63, %v396_v63  ;;  %v399_v11 = vadd.f32 -1.0, %v77_v6  ;;  %v89_v54 = vld [vmem:[#allocation3 + $0xc0] sm:$0xff]  ;;  %v92_v2 = vld [vmem:[#allocation3 + $0xd8] sm:$0xff] }
  0x21   :  { %v342_v57 = vadd.f32 %v341_v52, %v292_v47  ;;  %v171_v12 = vmul.f32 %v397_v3, %v397_v3  ;;  %v400_v15 = vadd.f32 -1.0, %v78_v10  ;;  %v172_v16 = vmul.f32 %v398_v7, %v398_v7  ;;  %v93_v6 = vld [vmem:[#allocation3 + $0xe0] sm:$0xff]  ;;  %v94_v10 = vld [vmem:[#allocation3 + $0xe8] sm:$0xff] }
  0x22   :  { %v401_v19 = vadd.f32 -1.0, %v79_v14  ;;  %v173_v20 = vmul.f32 %v399_v11, %v399_v11  ;;  %v402_v23 = vadd.f32 -1.0, %v80_v18  ;;  %v403_v27 = vadd.f32 -1.0, %v81_v22  ;;  %v95_v14 = vld [vmem:[#allocation3 + $0xf0] sm:$0xff]  ;;  %v96_v18 = vld [vmem:[#allocation3 + $0xf8] sm:$0xff] }
  0x23   :  { %v343_v61 = vadd.f32 %v342_v57, %v293_v51  ;;  %v174_v24 = vmul.f32 %v400_v15, %v400_v15  ;;  %v404_v31 = vadd.f32 -1.0, %v82_v26  ;;  %v405_v35 = vadd.f32 -1.0, %v83_v30 }
  0x24   :  { %v175_v28 = vmul.f32 %v401_v19, %v401_v19  ;;  %v176_v32 = vmul.f32 %v402_v23, %v402_v23  ;;  %v177_v36 = vmul.f32 %v403_v27, %v403_v27  ;;  %v406_v39 = vadd.f32 -1.0, %v84_v34 }
  0x25   :  { %v344_v1 = vadd.f32 %v343_v61, %v294_v56  ;;  %v178_v40 = vmul.f32 %v404_v31, %v404_v31  ;;  %v407_v43 = vadd.f32 -1.0, %v85_v38  ;;  %v179_v44 = vmul.f32 %v405_v35, %v405_v35 }
  0x26   :  { %v408_v47 = vadd.f32 -1.0, %v86_v42  ;;  %v180_v48 = vmul.f32 %v406_v39, %v406_v39  ;;  %v409_v51 = vadd.f32 -1.0, %v87_v46  ;;  %v410_v55 = vadd.f32 -1.0, %v88_v50 }
  0x27   :  { %v345_v5 = vadd.f32 %v344_v1, %v295_v60  ;;  %v181_v52 = vmul.f32 %v407_v43, %v407_v43  ;;  %v411_v59 = vadd.f32 -1.0, %v89_v54  ;;  %v412_v63 = vadd.f32 -1.0, %v90_v58 }
  0x28   :  { %v182_v56 = vmul.f32 %v408_v47, %v408_v47  ;;  %v183_v60 = vmul.f32 %v409_v51, %v409_v51  ;;  %v413_v3 = vadd.f32 -1.0, %v91_v62  ;;  %v414_v7 = vadd.f32 -1.0, %v92_v2 }
  0x29   :  { %v346_v9 = vadd.f32 %v345_v5, %v296_v0  ;;  %v184_v0 = vmul.f32 %v410_v55, %v410_v55  ;;  %v415_v11 = vadd.f32 -1.0, %v93_v6  ;;  %v416_v15 = vadd.f32 -1.0, %v94_v10 }
  0x2a   :  { %v417_v19 = vadd.f32 -1.0, %v95_v14  ;;  %v418_v22 = vadd.f32 -1.0, %v96_v18 }
  0x2b   :  { %v347_v13 = vadd.f32 %v346_v9, %v169_v4  ;;  %v185_v4 = vmul.f32 %v411_v59, %v411_v59  ;;  %v190_v23 = vmul.f32 %v416_v15, %v416_v15 }
  0x2c   :  { %v192_v27 = vmul.f32 %v418_v22, %v418_v22 }
  0x2d   :  { %v348_v17 = vadd.f32 %v347_v13, %v170_v8  ;;  %v186_v8 = vmul.f32 %v412_v63, %v412_v63 }
  0x2f   :  { %v349_v21 = vadd.f32 %v348_v17, %v171_v12  ;;  %v187_v12 = vmul.f32 %v413_v3, %v413_v3 }
  0x31   :  { %v350_v25 = vadd.f32 %v349_v21, %v172_v16  ;;  %v188_v16 = vmul.f32 %v414_v7, %v414_v7 }
  0x33   :  { %v351_v29 = vadd.f32 %v350_v25, %v173_v20  ;;  %v189_v20 = vmul.f32 %v415_v11, %v415_v11  ;;  %v191_v25 = vmul.f32 %v417_v19, %v417_v19 }
  0x35   :  { %v352_v33 = vadd.f32 %v351_v29, %v174_v24 }
  0x37   :  { %v353_v37 = vadd.f32 %v352_v33, %v175_v28 }
  0x39   :  { %v354_v41 = vadd.f32 %v353_v37, %v176_v32 }
  0x3b   :  { %v355_v45 = vadd.f32 %v354_v41, %v177_v36 }
  0x3d   :  { %v356_v49 = vadd.f32 %v355_v45, %v178_v40 }
  0x3f   :  { %v357_v53 = vadd.f32 %v356_v49, %v179_v44 }
  0x41   :  { %v358_v57 = vadd.f32 %v357_v53, %v180_v48 }
  0x43   :  { %v359_v61 = vadd.f32 %v358_v57, %v181_v52 }
  0x45   :  { %v360_v1 = vadd.f32 %v359_v61, %v182_v56 }
  0x47   :  { %v361_v5 = vadd.f32 %v360_v1, %v183_v60 }
  0x49   :  { %v362_v9 = vadd.f32 %v361_v5, %v184_v0 }
  0x4b   :  { %v363_v13 = vadd.f32 %v362_v9, %v185_v4 }
  0x4d   :  { %v364_v17 = vadd.f32 %v363_v13, %v186_v8 }
  0x4f   :  { %v365_v21 = vadd.f32 %v364_v17, %v187_v12 }
  0x51   :  { %v366_v24 = vadd.f32 %v365_v21, %v188_v16 }
  0x53   :  { %v367_v26 = vadd.f32 %v366_v24, %v189_v20 }
  0x55   :  { %v368_v28 = vadd.f32 %v367_v26, %v190_v23 }
  0x57   :  { %v369_v29 = vadd.f32 %v368_v28, %v191_v25 }
  0x59   :  { %v370_v30 = vadd.f32 %v369_v29, %v192_v27 }
  0x5b   :  { %371 = vst [vmem:[#allocation6] sm:$0xff] %v370_v30 }
  0x5c   :  { %464 = shalt.err (!%p461_p12)
}
  0x5d   :  { %s465_s24 = scalar_lea.hbm %s518_s1, 128 }
  0x5e   :  { %p466_p13 = scmp.ne.s32.totalorder %s518_s1, %s465_s24  ;;  %p469_p0 = scmp.lt.u32.totalorder %s465_s24, %s518_s1 }
  0x60   :  { %p471_p1 = pnand %p469_p0, %p466_p13 }
  0x62   :  { %474 = shalt.err (!%p471_p1)
}
  0x63   :  { %381 = dma.vmem_to_hbm [thread:$0]  %s379_s20, 128, %s518_s1, [#allocation5]  }
  0x64   :  { %477 = dma.done.wait [#allocation5], 128  }
  0x65   :  { %478 = vsyncadd [#allocation5], 4294967168 }
  0x66   :  { %385 = vsyncpa [#allocation4], 1 }
  0x67   :  { %386 = vsyncpa [#allocation5], 1 }

</bundles_post_ra>
